<compile_context>
chip_gen: v6e
topology: v6e:2x2x1
jax: 0.10.0
libtpu: 0.0.40
codegen_flags: <defaults>
</compile_context>

<pallas_src>
import jax
import jax.numpy as jnp
from jax import lax
from jax.experimental import pallas as pl
from jax.experimental.pallas import tpu as pltpu


# --------------------------------------------------------------------------
# Pallas kernel: Bahdanau attention for TB batch rows per grid step.
#   e       = tanh( Wa(q) + Ua(k) )                  (TB, S, H)
#   scores  = Va . e                                 (TB, 1, S)   lane-dense
#   weights = softmax(scores, axis=-1)               (TB, 1, S)
#   context = weights @ keys                         (TB, 1, H)
# Wa(q)+bias is precomputed in the wrapper and arrives as qp_ref (TB, 1, H).
# --------------------------------------------------------------------------
def _bahdanau_attn_kernel(qp_ref, k_ref, ua_ref, uab_ref, va_ref, vab_ref,
                          ctx_ref, w_ref):
    TB, S, H = k_ref.shape
    k = k_ref[...]                                   # (TB, S, H)  matmul dtype

    # Ua(keys): one dense (TB*S, H) @ (H, H) MXU matmul.  x @ W^T expressed by
    # contracting dim 1 of the weight, so no transposed copy is ever built.
    k2 = k.reshape(TB * S, H)
    kp2 = lax.dot_general(k2, ua_ref[...], (((1,), (1,)), ((), ())),
                          preferred_element_type=jnp.float32)
    kp2 = kp2 + uab_ref[...]                         # (TB*S, H) f32
    kp = kp2.reshape(TB, S, H)

    # Add the precomputed query projection (broadcast over S) and tanh in f32
    # (VPU/EUP path stays f32 -> v5e-safe).
    e = jnp.tanh(kp + qp_ref[...])                   # (TB, S, H) f32

    # scores = Va . e  -> lane-dense (TB, 1, S) via a batched matvec (MXU).
    # (Va bias is a softmax shift-invariant constant; kept for faithfulness.)
    va_b = jnp.broadcast_to(va_ref[...].reshape(1, 1, H), (TB, 1, H))
    scores = jnp.einsum("bqh,bsh->bqs", va_b, e,
                        preferred_element_type=jnp.float32) + vab_ref[0]

    # Softmax over S (lane axis).
    m = jnp.max(scores, axis=-1, keepdims=True)      # (TB, 1, 1)
    p = jnp.exp(scores - m)                          # (TB, 1, S)
    denom = jnp.sum(p, axis=-1, keepdims=True)       # (TB, 1, 1)
    w = p * pl.reciprocal(denom, approx=True)        # (TB, 1, S)

    # context = weights @ keys  (batched MXU matmul, f32 accumulation).
    ctx = jnp.einsum("bqs,bsh->bqh", w.astype(k.dtype), k,
                     preferred_element_type=jnp.float32)   # (TB, 1, H)

    ctx_ref[...] = ctx.astype(ctx_ref.dtype)
    w_ref[...] = w.astype(w_ref.dtype)               # lane-dense store


def _choose_batch_tile(B, S, H, budget_bytes=16 << 20, cap=64):
    """Largest batch tile whose double-buffered f32 working set fits the budget
    (conservative for v7x's 64 MiB/TC VMEM), while keeping >= 2 grid steps so
    both TensorCores get work when the chip has two."""
    per_row = 2 * 4 * (S * H + 2 * H + S)        # keys + q_proj + ctx + weights
    tb = min(cap, max(1, budget_bytes // max(per_row, 1)))
    if B >= 2:
        tb = min(tb, max(1, B // 2))
    return max(1, int(tb))


def bahdanau_attention(query, keys, attn_params, *, matmul_dtype=jnp.float32,
                       batch_tile=None):
    """query: (B, 1, H), keys: (B, S, H) -> (context (B,1,H), weights (B,1,S)).

    matmul_dtype=jnp.bfloat16 feeds the MXU (keys / Ua weight) in bf16 on
    v6e / v7x; elementwise math and accumulation stay f32.
    """
    B, _, H = query.shape
    S = keys.shape[1]

    ua = attn_params["Ua_w"]
    uab = attn_params["Ua_b"].reshape(1, H).astype(jnp.float32)
    va = attn_params["Va_w"].reshape(1, H).astype(jnp.float32)
    vab = attn_params["Va_b"].reshape(1).astype(jnp.float32)   # SMEM scalar

    # Hoist Wa(query)+bias: one dense (B, H) @ (H, H) matmul over the whole
    # batch (einsum contracts dim 1 -> no transposed weight copy).
    q2 = query[:, 0, :]
    q_proj = (jnp.einsum("bh,oh->bo", q2, attn_params["Wa_w"])
              + attn_params["Wa_b"]).astype(jnp.float32)[:, None, :]   # (B,1,H)

    keys_c = keys.astype(matmul_dtype)
    ua_c = ua.astype(matmul_dtype)

    TB = int(batch_tile) if batch_tile is not None else _choose_batch_tile(B, S, H)
    TB = min(TB, B)
    B_pad = ((B + TB - 1) // TB) * TB
    if B_pad != B:
        pad = B_pad - B
        q_proj = jnp.pad(q_proj, ((0, pad), (0, 0), (0, 0)))
        keys_c = jnp.pad(keys_c, ((0, pad), (0, 0), (0, 0)))

    context, weights = pl.pallas_call(
        _bahdanau_attn_kernel,
        out_shape=(
            jax.ShapeDtypeStruct((B_pad, 1, H), jnp.float32),
            jax.ShapeDtypeStruct((B_pad, 1, S), jnp.float32),
        ),
        grid_spec=pltpu.PrefetchScalarGridSpec(
            num_scalar_prefetch=0,
            grid=(B_pad // TB,),
            in_specs=[
                pl.BlockSpec((TB, 1, H), lambda b: (b, 0, 0)),   # Wa(q)+bias
                pl.BlockSpec((TB, S, H), lambda b: (b, 0, 0)),   # keys
                pl.BlockSpec((H, H), lambda b: (0, 0)),          # Ua weight
                pl.BlockSpec((1, H), lambda b: (0, 0)),          # Ua bias
                pl.BlockSpec((1, H), lambda b: (0, 0)),          # Va weight
                pl.BlockSpec(memory_space=pltpu.MemorySpace.SMEM),  # Va bias
            ],
            out_specs=[
                pl.BlockSpec((TB, 1, H), lambda b: (b, 0, 0)),   # context
                pl.BlockSpec((TB, 1, S), lambda b: (b, 0, 0)),   # weights
            ],
        ),
        compiler_params=pltpu.CompilerParams(
            dimension_semantics=("parallel",),
            vmem_limit_bytes=32 * 1024 * 1024,
        ),
    )(q_proj, keys_c, ua_c, uab, va, vab)

    # TODO(synk): if S grows very large, add an "arbitrary" S-tile grid axis with
    # an online-softmax accumulator instead of loading the full (TB, S, H) block.
    return context[:B], weights[:B]


# --------------------------------------------------------------------------
# DecoderAttnBase forward
# --------------------------------------------------------------------------
def decoder_attn_base_forward(params, input_seq, hidden, cell, encoder_outputs):
    # embedding + dropout (inference / eval mode -> identity)
    embedded = jnp.take(params["embedding"], input_seq, axis=0)        # (B, T, E)

    query = hidden[-1][:, None, :]                                     # (B, 1, H)
    context, attn_weights = bahdanau_attention(query, encoder_outputs,
                                               params["attention"])
    embedded_attn = jnp.concatenate([embedded, context], axis=2)       # (B, T, E+H)

    # TODO(synk): DecoderAttnBase sets self.network = None, so the RNN step and
    # the subsequent self.out(output) projection are undefined in the base class.
    output = None
    return output, hidden, cell, attn_weights, context, embedded_attn


# --------------------------------------------------------------------------
# Pure-JAX reference for the attention (correctness check).
# --------------------------------------------------------------------------
def _attention_ref(query, keys, ap):
    qp = jnp.matmul(query, ap["Wa_w"].T) + ap["Wa_b"]
    kp = jnp.matmul(keys, ap["Ua_w"].T) + ap["Ua_b"]
    scores = jnp.matmul(jnp.tanh(qp + kp), ap["Va_w"].T) + ap["Va_b"]   # (B, S, 1)
    scores = scores[..., 0][:, None, :]                                 # (B, 1, S)
    weights = jax.nn.softmax(scores, axis=-1)
    context = jnp.matmul(weights, keys)
    return context, weights


def _init_params(key, output_dim, embed_dim, hidden_dim):
    ks = jax.random.split(key, 8)
    s = 0.1
    return {
        "embedding": s * jax.random.normal(ks[0], (output_dim, embed_dim), jnp.float32),
        "attention": {
            "Wa_w": s * jax.random.normal(ks[1], (hidden_dim, hidden_dim), jnp.float32),
            "Wa_b": s * jax.random.normal(ks[2], (hidden_dim,), jnp.float32),
            "Ua_w": s * jax.random.normal(ks[3], (hidden_dim, hidden_dim), jnp.float32),
            "Ua_b": s * jax.random.normal(ks[4], (hidden_dim,), jnp.float32),
            "Va_w": s * jax.random.normal(ks[5], (1, hidden_dim), jnp.float32),
            "Va_b": s * jax.random.normal(ks[6], (1,), jnp.float32),
        },
        # self.out: Linear(hidden_dim, output_dim) — declared but unused because
        # self.network is None in the base class.
        "out_w": s * jax.random.normal(ks[7], (output_dim, hidden_dim), jnp.float32),
        "out_b": jnp.zeros((output_dim,), jnp.float32),
    }


if __name__ == "__main__":
    output_dim, embed_dim, hidden_dim = 10, 16, 32
    B, T, S, L = 4, 1, 8, 1

    key = jax.random.PRNGKey(0)
    k_par, k_in, k_hid, k_enc = jax.random.split(key, 4)

    params = _init_params(k_par, output_dim, embed_dim, hidden_dim)

    input_seq = jax.random.randint(k_in, (B, T), 0, output_dim, dtype=jnp.int32)
    hidden = jax.random.normal(k_hid, (L, B, hidden_dim), jnp.float32)
    cell = jax.random.normal(k_hid, (L, B, hidden_dim), jnp.float32)
    encoder_outputs = jax.random.normal(k_enc, (B, S, hidden_dim), jnp.float32)

    (output, hidden_out, cell_out, attn_weights,
     context, embedded_attn) = decoder_attn_base_forward(
        params, input_seq, hidden, cell, encoder_outputs)
    jax.block_until_ready((attn_weights, context, embedded_attn))

    # Correctness check against pure-JAX reference (f32 path).
    query = hidden[-1][:, None, :]
    ctx_ref, w_ref = _attention_ref(query, encoder_outputs, params["attention"])
    assert jnp.allclose(context, ctx_ref, atol=2e-3, rtol=2e-3)
    assert jnp.allclose(attn_weights, w_ref, atol=2e-3, rtol=2e-3)
    assert attn_weights.shape == (B, 1, S)
    assert context.shape == (B, 1, hidden_dim)
    assert embedded_attn.shape == (B, T, embed_dim + hidden_dim)

    # bf16 MXU-input path (v6e / v7x optimization) — looser tolerance.
    ctx_bf16, w_bf16 = bahdanau_attention(query, encoder_outputs,
                                          params["attention"],
                                          matmul_dtype=jnp.bfloat16)
    jax.block_until_ready((ctx_bf16, w_bf16))
    assert jnp.allclose(ctx_bf16, ctx_ref, atol=5e-2, rtol=5e-2)
    assert jnp.allclose(w_bf16, w_ref, atol=5e-2, rtol=5e-2)

    print("KERNEL_OK")
</pallas_src>

<mosaic_0001>
module attributes {stable_mosaic.version = 11 : i64} {
  func.func @_bahdanau_attn_kernel(%arg0: i32, %arg1: memref<2x1x32xf32, #tpu.memory_space<vmem>>, %arg2: memref<2x8x32xf32, #tpu.memory_space<vmem>>, %arg3: memref<32x32xf32, #tpu.memory_space<vmem>>, %arg4: memref<1x32xf32, #tpu.memory_space<vmem>>, %arg5: memref<1x32xf32, #tpu.memory_space<vmem>>, %arg6: memref<1xf32, #tpu.memory_space<smem>>, %arg7: memref<2x1x32xf32, #tpu.memory_space<vmem>>, %arg8: memref<2x1x8xf32, #tpu.memory_space<vmem>>) attributes {dimension_semantics = [#tpu.dimension_semantics<parallel>], iteration_bounds = array<i64: 2>, scalar_prefetch = 0 : i64, scratch_operands = 0 : i64, tpu.core_type = #tpu.core_type<tc>, window_params = [{transform_indices = @transform_0, window_bounds = array<i64: 2, 1, 32>}, {transform_indices = @transform_1, window_bounds = array<i64: 2, 8, 32>}, {pipeline_mode = #tpu.pipeline_mode<synchronous>, transform_indices = @transform_2, window_bounds = array<i64: 32, 32>}, {pipeline_mode = #tpu.pipeline_mode<synchronous>, transform_indices = @transform_3, window_bounds = array<i64: 1, 32>}, {pipeline_mode = #tpu.pipeline_mode<synchronous>, transform_indices = @transform_4, window_bounds = array<i64: 1, 32>}, {transform_indices = @transform_5, window_bounds = array<i64: 1>}, {transform_indices = @transform_6, window_bounds = array<i64: 2, 1, 32>}, {transform_indices = @transform_7, window_bounds = array<i64: 2, 1, 8>}]} {
    %c0 = arith.constant 0 : index
    %c0_0 = arith.constant 0 : index
    %c0_1 = arith.constant 0 : index
    %0 = vector.load %arg2[%c0, %c0_0, %c0_1] : memref<2x8x32xf32, #tpu.memory_space<vmem>>, vector<2x8x32xf32>
    %1 = vector.shape_cast %0 : vector<2x8x32xf32> to vector<16x32xf32>
    %c0_2 = arith.constant 0 : index
    %c0_3 = arith.constant 0 : index
    %2 = vector.load %arg3[%c0_2, %c0_3] : memref<32x32xf32, #tpu.memory_space<vmem>>, vector<32x32xf32>
    %cst = arith.constant dense<0.000000e+00> : vector<16x32xf32>
    %3 = tpu.matmul %1, %2, %cst {dimension_numbers = #tpu.dot_dimension_numbers<[1], [1], [0], [0], [0, 0, 1, 0], [], []>} : vector<16x32xf32>, vector<32x32xf32>, vector<16x32xf32> -> vector<16x32xf32>
    %c0_4 = arith.constant 0 : index
    %c0_5 = arith.constant 0 : index
    %4 = vector.load %arg4[%c0_4, %c0_5] : memref<1x32xf32, #tpu.memory_space<vmem>>, vector<1x32xf32>
    %5 = vector.broadcast %4 : vector<1x32xf32> to vector<16x32xf32>
    %6 = arith.addf %3, %5 : vector<16x32xf32>
    %7 = vector.shape_cast %6 : vector<16x32xf32> to vector<2x8x32xf32>
    %c0_6 = arith.constant 0 : index
    %c0_7 = arith.constant 0 : index
    %c0_8 = arith.constant 0 : index
    %8 = vector.load %arg1[%c0_6, %c0_7, %c0_8] : memref<2x1x32xf32, #tpu.memory_space<vmem>>, vector<2x1x32xf32>
    %9 = vector.broadcast %8 : vector<2x1x32xf32> to vector<2x8x32xf32>
    %10 = arith.addf %7, %9 : vector<2x8x32xf32>
    %11 = math.tanh %10 : vector<2x8x32xf32>
    %c0_9 = arith.constant 0 : index
    %c0_10 = arith.constant 0 : index
    %12 = vector.load %arg5[%c0_9, %c0_10] : memref<1x32xf32, #tpu.memory_space<vmem>>, vector<1x32xf32>
    %13 = vector.shape_cast %12 : vector<1x32xf32> to vector<1x1x32xf32>
    %14 = vector.shape_cast %13 : vector<1x1x32xf32> to vector<1x1x32xf32>
    %15 = vector.broadcast %14 : vector<1x1x32xf32> to vector<2x1x32xf32>
    "tpu.trace_start"() <{level = 10 : i32, message = "bqh,bsh->bqs"}> : () -> ()
    %cst_11 = arith.constant dense<0.000000e+00> : vector<2x1x8xf32>
    %16 = tpu.matmul %15, %11, %cst_11 {dimension_numbers = #tpu.dot_dimension_numbers<[2], [2], [1], [1], [0, 0, 0, 1, 1, 1], [0], [0]>} : vector<2x1x32xf32>, vector<2x8x32xf32>, vector<2x1x8xf32> -> vector<2x1x8xf32>
    "tpu.trace_stop"() : () -> ()
    %c0_12 = arith.constant 0 : index
    %17 = memref.load %arg6[%c0_12] : memref<1xf32, #tpu.memory_space<smem>>
    %18 = vector.broadcast %17 : f32 to vector<2x1x8xf32>
    %19 = arith.addf %16, %18 : vector<2x1x8xf32>
    %cst_13 = arith.constant dense<0xFF800000> : vector<2x1xf32>
    %20 = vector.multi_reduction <maximumf>, %19, %cst_13 [2] : vector<2x1x8xf32> to vector<2x1xf32>
    %21 = vector.shape_cast %20 : vector<2x1xf32> to vector<2x1x1xf32>
    %22 = vector.broadcast %21 : vector<2x1x1xf32> to vector<2x1x8xf32>
    %23 = arith.subf %19, %22 : vector<2x1x8xf32>
    %24 = math.exp %23 : vector<2x1x8xf32>
    %cst_14 = arith.constant dense<0.000000e+00> : vector<2x1xf32>
    %25 = vector.multi_reduction <add>, %24, %cst_14 [2] : vector<2x1x8xf32> to vector<2x1xf32>
    %26 = vector.shape_cast %25 : vector<2x1xf32> to vector<2x1x1xf32>
    %27 = tpu.reciprocal %26 {approx = true} : vector<2x1x1xf32> -> vector<2x1x1xf32>
    %28 = vector.broadcast %27 : vector<2x1x1xf32> to vector<2x1x8xf32>
    %29 = arith.mulf %24, %28 : vector<2x1x8xf32>
    "tpu.trace_start"() <{level = 10 : i32, message = "bqs,bsh->bqh"}> : () -> ()
    %cst_15 = arith.constant dense<0.000000e+00> : vector<2x1x32xf32>
    %30 = tpu.matmul %29, %0, %cst_15 {dimension_numbers = #tpu.dot_dimension_numbers<[2], [1], [1], [2], [0, 0, 0, 1, 1, 2], [0], [0]>} : vector<2x1x8xf32>, vector<2x8x32xf32>, vector<2x1x32xf32> -> vector<2x1x32xf32>
    "tpu.trace_stop"() : () -> ()
    %c0_16 = arith.constant 0 : index
    %c0_17 = arith.constant 0 : index
    %c0_18 = arith.constant 0 : index
    %31 = vector.load %arg7[%c0_16, %c0_17, %c0_18] : memref<2x1x32xf32, #tpu.memory_space<vmem>>, vector<2x1x32xf32>
    tpu.vector_store %arg7[%c0_16, %c0_17, %c0_18], %30 {strides = array<i32>} : memref<2x1x32xf32, #tpu.memory_space<vmem>>, vector<2x1x32xf32>,
    %c0_19 = arith.constant 0 : index
    %c0_20 = arith.constant 0 : index
    %c0_21 = arith.constant 0 : index
    %32 = vector.load %arg8[%c0_19, %c0_20, %c0_21] : memref<2x1x8xf32, #tpu.memory_space<vmem>>, vector<2x1x8xf32>
    tpu.vector_store %arg8[%c0_19, %c0_20, %c0_21], %29 {strides = array<i32>} : memref<2x1x8xf32, #tpu.memory_space<vmem>>, vector<2x1x8xf32>,
    return
  }
  func.func @transform_0(%arg0: i32) -> (i32, i32, i32) {
    %c0_i32 = arith.constant 0 : i32
    %c0_i32_0 = arith.constant 0 : i32
    %c0_i32_1 = arith.constant 0 : i32
    return %arg0, %c0_i32, %c0_i32_0 : i32, i32, i32
  }
  func.func @transform_1(%arg0: i32) -> (i32, i32, i32) {
    %c0_i32 = arith.constant 0 : i32
    %c0_i32_0 = arith.constant 0 : i32
    %c0_i32_1 = arith.constant 0 : i32
    return %arg0, %c0_i32, %c0_i32_0 : i32, i32, i32
  }
  func.func @transform_2(%arg0: i32) -> (i32, i32) {
    %c0_i32 = arith.constant 0 : i32
    %c0_i32_0 = arith.constant 0 : i32
    %c0_i32_1 = arith.constant 0 : i32
    return %c0_i32, %c0_i32_0 : i32, i32
  }
  func.func @transform_3(%arg0: i32) -> (i32, i32) {
    %c0_i32 = arith.constant 0 : i32
    %c0_i32_0 = arith.constant 0 : i32
    %c0_i32_1 = arith.constant 0 : i32
    return %c0_i32, %c0_i32_0 : i32, i32
  }
  func.func @transform_4(%arg0: i32) -> (i32, i32) {
    %c0_i32 = arith.constant 0 : i32
    %c0_i32_0 = arith.constant 0 : i32
    %c0_i32_1 = arith.constant 0 : i32
    return %c0_i32, %c0_i32_0 : i32, i32
  }
  func.func @transform_5(%arg0: i32) -> i32 {
    %c0_i32 = arith.constant 0 : i32
    %c0_i32_0 = arith.constant 0 : i32
    return %c0_i32 : i32
  }
  func.func @transform_6(%arg0: i32) -> (i32, i32, i32) {
    %c0_i32 = arith.constant 0 : i32
    %c0_i32_0 = arith.constant 0 : i32
    %c0_i32_1 = arith.constant 0 : i32
    return %arg0, %c0_i32, %c0_i32_0 : i32, i32, i32
  }
  func.func @transform_7(%arg0: i32) -> (i32, i32, i32) {
    %c0_i32 = arith.constant 0 : i32
    %c0_i32_0 = arith.constant 0 : i32
    %c0_i32_1 = arith.constant 0 : i32
    return %arg0, %c0_i32, %c0_i32_0 : i32, i32, i32
  }
}

</mosaic_0001>

<bundles_post_ra>
// kernel: tpu_custom_call.1
= control target key start
LH: loop header
LB: loop body
LE: loop exit
PB: predicated region body
PF: predicated region fallthrough
CT: control target
= control target key end

     0   :  { %s1727_s0 = inlined_call_operand.hbm [shape: f32[4,1,32], index: 0, kind: input, shape index: {}]   ;;  %s1728_s1 = inlined_call_operand.hbm [shape: f32[4,8,32], index: 1, kind: input, shape index: {}]   ;;  %s1729_s2 = inlined_call_operand.hbm [shape: f32[32,32], index: 2, kind: input, shape index: {}]   ;;  %s1730_s3 = inlined_call_operand.vmem [shape: f32[1,32], index: 3, kind: input, shape index: {}]   ;;  %s1731_s4 = inlined_call_operand.vmem [shape: f32[1,32], index: 4, kind: input, shape index: {}]   ;;  %s1732_s5 = inlined_call_operand.<no memory space> [shape: f32[1], index: 5, kind: input, shape index: {}]   ;;  %s1733_s6 = inlined_call_operand.hbm [shape: f32[4,1,32], index: 6, kind: output, shape index: {0}]   ;;  %s1734_s7 = inlined_call_operand.hbm [shape: f32[4,1,8], index: 7, kind: output, shape index: {1}]  }
   0x1   :  { %1741 = sst [smem:[#allocation19_spill]] %s1727_s0 }
   0x2   :  { %1742 = sst [smem:[#allocation20_spill]] %s1729_s2 }
   0x3   :  { %13 = sst [smem:[#allocation2]] %s1732_s5 }
   0x4   :  { %14 = vsyncpa [#allocation4], 0 }
   0x5   :  { %16 = vsyncpa [#allocation4 + $0x1], 0 }
   0x6   :  { %17 = vsyncpa [#allocation7], 0 }
   0x7   :  { %19 = vsyncpa [#allocation7 + $0x1], 0 }
   0x8   :  { %20 = vsyncpa [#allocation5], 0 }
   0x9   :  { %22 = vsyncpa [#allocation5 + $0x1], 0 }
   0xa   :  { %23 = vsyncpa [#allocation11], 0 }
   0xb   :  { %25 = vsyncpa [#allocation11 + $0x1], 0  ;;  %s1408_s26 = smov 0   ;;  %s1410_s27 = smov 0  }
   0xc   :  { %s1412_s28 = smov 0   ;;  %s1414_s29 = smov 0  }
   0xd LB: > { %1743 = sst [smem:[#allocation17_spill]] %s1346_s28  ;;  %s1429_s5 = sadd.s32 4294967295, %s1350_s29   ;;  %s1350_s29 = sphi %s1414_s29, %s1766_s29   ;;  %s1346_s28 = sphi %s1412_s28, %s1763_s28   ;;  %s1342_s27 = sphi %s1410_s27, %s1765_s27   ;;  %s1338_s26 = sphi %s1408_s26, %s1764_s26  }
   0xe   : > { %s991_s30 = sadd.s32 4294967294, %s1350_s29   ;;  %p51_p0 = scmp.ne.s32.totalorder %s1342_s27, %s1338_s26 }
   0xf   : > { %p1736_p1 = scmp.eq.s32.totalorder %s1429_s5, 0  ;;  %p191_p3 = scmp.eq.s32.totalorder %s991_s30, 1 }
  0x10   : > { %p992_p5 = scmp.ge.s32.totalorder %s1350_s29, 1  ;;  %p224_p7 = scmp.lt.s32.totalorder %s1350_s29, 3 }
  0x11   : > { %p1438_p4 = por %p1736_p1, %p51_p0  ;;  %p1443_p6 = por %p191_p3, %p51_p0 }
  0x12   : > { %p1448_p8 = pnand %p992_p5, %p224_p7  ;;  %s1352_s11 = smov [#allocation8]  }
  0x13   : > { %s1744_s8 = scalar_select %p1438_p4, 1, 0 }
  0x14   : > { %s1745_s9 = scalar_select %p1443_p6, 1, 0 }
  0x15   : > { %s236_s12 = sshll.u32 %s1352_s11, 4  ;;  %p1091_p9 = pneg %p1448_p8  ;;  %s237_s12 = int_to_ptr.vmem [resolvable:$true] %s236_s12 }
  0x16   : > { %s1462_s14 = sadd.s32 1, %s1350_s29   ;;  %s38_s15 = sadd.s32 1, %s1346_s28 }
  0x17   : > { %p1457_p11 = pnand %p1091_p9, %p1736_p1  ;;  %s35_s16 = ssub.s32 %s1350_s29, %s1462_s14 }
  0x18   : > { %s1177_s17 = scalar_lea.vmem %s237_s12, 512  ;;  %p1185_p5 = scmp.lt.s32.totalorder %s237_s12, %s237_s12 }
  0x19   : > { %p1168_p12 = pneg %p1457_p11  ;;  %p1178_p13 = scmp.ne.s32.totalorder %s237_s12, %s1177_s17 }
  0x1a   : > { %p1186_p7 = scmp.lt.s32.totalorder %s1177_s17, %s1177_s17 }
  0x1b   : > { %p1180_p0 = pnand %p1178_p13, %p1168_p12 }
  0x1c   : > { %p1187_p10 = por %p1186_p7, %p1185_p5 }
  0x1d   : > { %p1181_p3 = pneg %p1180_p0 }
  0x1f   : > { %p1188_p2 = pnand %p1187_p10, %p1181_p3 }
  0x21   : > { %1191 = shalt.err (!%p1188_p2)
}
  0x22   : > { %s1735_s18 = smov 128   ;;  %s1737_s19 = smov 8  }
  0x23   : > { %s1748_s2 = sld [smem:[#allocation20_spill]]  ;;  %p36_p2 = scmp.eq.s32.totalorder %s35_s16, 0 }
  0x24   : > { %p45_p9 = scmp.ne.s32.totalorder %s1346_s28, %s1342_s27  ;;  %p46_p10 = scmp.eq.s32.totalorder %s1350_s29, 0 }
  0x25   : > { %p1110_p12 = scmp.lt.s32.totalorder %s1350_s29, 2  ;;  %p1750_p0 = scmp.eq.s32.totalorder %s1429_s5, 1 }
  0x26   : > { %s1482_s22 = scalar_select %p36_p2, %s1346_s28, %s38_s15  }
  0x27   : > { %p47_p13 = por %p46_p10, %p45_p9  ;;  %p1486_p3 = por %p1750_p0, %p45_p9 }
  0x28   : > { %1749 = sst [smem:[#allocation18_spill]] %s1482_s22  ;;  %s1491_s24 = sand.u32 1, %s1346_s28  }
  0x29   : > { %1094 = dma.hbm_to_vmem [thread:$0]  (!%p1457_p11), %s1748_s2, 512, %s237_s12, [#allocation7], %s1735_s18, %s1735_s18, %s1737_s19  }
  0x2a   : > { %s1751_s23 = scalar_select %p1486_p3, 1, 0 }
  0x2b   : > { %s1030_s25 = sshll.u32 %s1350_s29, 5  ;;  %s995_s30 = sshll.u32 %s1491_s24, 1 }
  0x2c   : > { %s1752_s0 = sld [smem:[#allocation19_spill]]  ;;  %s263_s15 = scalar_lea.vmem [#allocation3], %s995_s30 }
  0x2d   : > { %s270_s16 = sshll.u32 %s263_s15, 4  ;;  %p1500_p11 = pnand %p1110_p12, %p47_p13  ;;  %s1504_s16 = int_to_ptr.vmem [resolvable:$true] %s270_s16 }
  0x2e   : > { %s260_s20 = scalar_lea.sflag [#allocation4], %s1491_s24 }
  0x2f   : > { %p1194_p7 = pneg %p1500_p11 }
  0x32   : > { %s1498_s13 = scalar_lea.hbm %s1752_s0, %s1030_s25  ;;  %s1197_s11 = scalar_lea.hbm %s1752_s0, 64 }
  0x33   : > { %s1192_s21 = scalar_lea.hbm %s1498_s13, 32  ;;  %p1198_p10 = scmp.lt.s32.totalorder %s1498_s13, %s1752_s0 }
  0x34   : > { %p1193_p5 = scmp.ne.s32.totalorder %s1498_s13, %s1192_s21  ;;  %p1199_p12 = scmp.lt.s32.totalorder %s1197_s11, %s1192_s21 }
  0x36   : > { %p1195_p2 = pnand %p1194_p7, %p1193_p5  ;;  %p1200_p13 = por %p1199_p12, %p1198_p10 }
  0x38   : > { %p1196_p9 = pneg %p1195_p2 }
  0x3a   : > { %p1201_p0 = pnand %p1200_p13, %p1196_p9 }
  0x3c   : > { %1204 = shalt.err (!%p1201_p0)
}
  0x3d   : > { %s1205_s18 = scalar_lea.vmem %s1504_s16, 32  ;;  %s1355_s25 = smov [#allocation3]  }
  0x3e   : > { %p1206_p1 = scmp.ne.s32.totalorder %s1504_s16, %s1205_s18  ;;  %s1210_s30 = sshll.u32 %s1355_s25, 4  ;;  %s1211_s30 = int_to_ptr.vmem [resolvable:$false] %s1210_s30 }
  0x3f   : > { %s1212_s19 = scalar_lea.vmem %s1211_s30, 64  ;;  %p1213_p6 = scmp.lt.s32.totalorder %s1504_s16, %s1211_s30 }
  0x40   : > { %p1208_p5 = pnand %p1206_p1, %p1194_p7  ;;  %p1214_p3 = scmp.lt.s32.totalorder %s1212_s19, %s1205_s18 }
  0x42   : > { %p1209_p2 = pneg %p1208_p5  ;;  %p1215_p4 = por %p1214_p3, %p1213_p6 }
  0x44   : > { %p1216_p10 = pnand %p1215_p4, %p1209_p2 }
  0x46   : > { %1219 = shalt.err (!%p1216_p10)
}
  0x47   : > { %s1356_s21 = smov 16   ;;  %s1357_s11 = smov 1  }
  0x48   : > { %1098 = dma.hbm_to_vmem [thread:$0]  (!%p1500_p11), %s1498_s13, 32, %s1504_s16, %s260_s20, %s1356_s21, %s1356_s21, %s1357_s11  }
  0x49   : > { %s280_s12 = sand.u32 1, %s1350_s29   ;;  %s998_s15 = sshll.u32 %s1491_s24, 4 }
  0x4a   : > { %s1031_s25 = sshll.u32 %s1350_s29, 8  ;;  %s284_s18 = scalar_lea.vmem [#allocation6], %s998_s15 }
  0x4b   : > { %s291_s19 = sshll.u32 %s284_s18, 4  ;;  %s1539_s2 = scalar_lea.hbm %s1728_s1, %s1031_s25  ;;  %s1541_s19 = int_to_ptr.vmem [resolvable:$true] %s291_s19 }
  0x4c   : > { %s281_s22 = scalar_lea.sflag [#allocation7], %s280_s12  ;;  %s1220_s28 = scalar_lea.hbm %s1539_s2, 256 }
  0x4d   : > { %p1221_p1 = scmp.ne.s32.totalorder %s1539_s2, %s1220_s28  ;;  %s1225_s16 = scalar_lea.hbm %s1728_s1, 512 }
  0x4e   : > { %p1226_p3 = scmp.lt.s32.totalorder %s1539_s2, %s1728_s1  ;;  %p1227_p9 = scmp.lt.s32.totalorder %s1225_s16, %s1220_s28 }
  0x4f   : > { %p1223_p4 = pnand %p1221_p1, %p1194_p7 }
  0x50   : > { %p1228_p12 = por %p1227_p9, %p1226_p3 }
  0x51   : > { %p1224_p6 = pneg %p1223_p4 }
  0x53   : > { %p1229_p13 = pnand %p1228_p12, %p1224_p6 }
  0x55   : > { %1232 = shalt.err (!%p1229_p13)
}
  0x56   : > { %s1233_s21 = scalar_lea.vmem %s1541_s19, 256  ;;  %s1358_s11 = smov [#allocation6]  }
  0x57   : > { %p1234_p0 = scmp.ne.s32.totalorder %s1541_s19, %s1233_s21  ;;  %s1238_s12 = sshll.u32 %s1358_s11, 4  ;;  %s1239_s12 = int_to_ptr.vmem [resolvable:$false] %s1238_s12 }
  0x58   : > { %s1240_s15 = scalar_lea.vmem %s1239_s12, 512  ;;  %p1241_p10 = scmp.lt.s32.totalorder %s1541_s19, %s1239_s12 }
  0x59   : > { %p1236_p5 = pnand %p1234_p0, %p1194_p7  ;;  %p1242_p1 = scmp.lt.s32.totalorder %s1240_s15, %s1233_s21 }
  0x5b   : > { %p1237_p2 = pneg %p1236_p5  ;;  %p1243_p4 = por %p1242_p1, %p1241_p10 }
  0x5d   : > { %p1244_p3 = pnand %p1243_p4, %p1237_p2 }
  0x5f   : > { %1247 = shalt.err (!%p1244_p3)
}
  0x60   : > { %s1754_s28 = smov 8   ;;  %s1755_s25 = smov 128  }
  0x61   : > { %1101 = dma.hbm_to_vmem [thread:$0]  (!%p1500_p11), %s1539_s2, 256, %s1541_s19, %s281_s22, %s1755_s25, %s1755_s25, %s1754_s28  }
  0x62   : > { %303 = sbr.rel (%p1448_p8) target bundleno = 1061 (0x425), region = 44  ;;  %s1571_s18 = sand.u32 (!%p1448_p8), 1, %s1342_s27  }
  0x63   : > { %s1574_s30 = sshll.u32 (!%p1448_p8), %s1571_s18, 1  ;;  %s306_s24 = scalar_lea.sflag (!%p1448_p8), [#allocation4], %s1571_s18 }
  0x64   : > { %s309_s17 = scalar_lea.vmem (!%p1448_p8), [#allocation3], %s1574_s30  ;;  %p1756_p7 = scmp.ne.s32.totalorder (!%p1448_p8), %s1744_s8, 0 }
  0x67   : > { %1317 = dma.done.wait (%p1756_p7), %s306_s24, 32  }
  0x68   : > { %1319 = vsyncadd (%p1756_p7), %s306_s24, 4294967264  ;;  %s314_s2 = sand.u32 1, %s1429_s5   ;;  %s1003_s10 = sshll.u32 %s1571_s18, 4 }
  0x69   : > { %s315_s22 = scalar_lea.sflag [#allocation7], %s314_s2  ;;  %s318_s19 = scalar_lea.vmem [#allocation6], %s1003_s10 }
  0x6a   : > { %1321 = dma.done.wait (%p1756_p7), %s315_s22, 256  }
  0x6b   : > { %1323 = vsyncadd (%p1756_p7), %s315_s22, 4294967040  ;;  %p1757_p8 = scmp.eq.s32.totalorder %s1429_s5, 0 }
  0x6d   : > { %1325 = dma.done.wait (%p1757_p8), [#allocation7], 512   ;;  %p1758_p11 = pmov %p1757_p8 }
  0x6e   : > { %vm380_vm0 = vcmask 261120   ;;  %v372_v0 = vld [vmem:[#allocation8 + $0x18] sm:$0xff]  ;;  %v371_v1 = vld [vmem:[#allocation8 + $0x10] sm:$0xff]  ;;  %v370_v3 = vld [vmem:[#allocation8 + $0x8] sm:$0xff]  ;;  %v1359_v6 = vmov 0.0   ;;  %vm1360_vm1 = vmmov 0  }
  0x6f   : > { %1327 = vsyncadd (%p1758_p11), [#allocation7], 4294966784  ;;  %1048 = vmatprep.subr.msk.mxu0 %vm380_vm0, %v372_v0  ;;  %v367_v2 = vld [vmem:[%s318_s19] sm:$0xff]  ;;  %v1601_v5 = vld [vmem:[%s318_s19 + $0x8] sm:$0xff]  ;;  %1059 = vmatprep.subr.mxu1 %v1359_v6  ;;  %s493_s0 = sld [smem:[#allocation2]]  ;;  %vm644_vm2 = vcmask 57344  }
  0x70   : > { %1049 = vmatpush3.xpose.msk.msra.mxu0 %vm380_vm0, %v372_v0  ;;  %1056 = vmatprep.mubr.msk.f32.mxu0 %vm380_vm0, %v367_v2  ;;  %v369_v4 = vld [vmem:[#allocation8] sm:$0xff]  ;;  %v1007_v8 = vld [vmem:[%s1730_s3] ss:$0 sm:$0xff]  ;;  %v1015_v13 = vld [vmem:[%s309_s17 + $0x1] ss:$0 sm:$0xff]  ;;  %vm667_vm3 = vcmask 64512  }
  0x71   : > { %1050 = vmatprep.subr.msk.mxu0 %vm380_vm0, %v371_v1  ;;  %1061 = vmatprep.mubr.msk.f32.mxu1 %vm1360_vm1, %v1359_v6  ;;  %v1014_v10 = vld [vmem:[%s309_s17] ss:$0 sm:$0xff]  ;;  %s362_s21 = scalar_lea.vmem [#allocation10], %s1574_s30  ;;  %s1032_s11 = sshll.u32 %s1429_s5, 5 }
  0x72   : > { %v492_v17 = vld [vmem:[%s1731_s4] sm:$0x1]  ;;  %s854_s12 = sshll.u32 %s362_s21, 4  ;;  %s1645_s25 = scalar_lea.hbm %s1734_s7, %s1032_s11  ;;  %s1647_s12 = int_to_ptr.vmem [resolvable:$true] %s854_s12 }
  0x73   : > { %s825_s24 = scalar_lea.sflag [#allocation11], %s1571_s18  ;;  %s1248_s17 = scalar_lea.vmem %s1647_s12, 32 }
  0x74   : > { %1051 = vmatpush3.xpose.msk.msra.mxu0 %vm380_vm0, %v371_v1  ;;  %p1249_p6 = scmp.ne.s32.totalorder %s1647_s12, %s1248_s17  ;;  %p1759_p9 = scmp.ne.s32.totalorder %s1751_s23, 0 }
  0x75   : > { %1052 = vmatprep.subr.msk.mxu0 %vm380_vm0, %v370_v3  ;;  %v494_v19 = vstv %s493_s0  ;;  %s1361_s2 = smov [#allocation10]  }
  0x76   : > { %p1250_p12 = pnand %p1249_p6, %p1759_p9  ;;  %s1252_s10 = sshll.u32 %s1361_s2, 4  ;;  %s1253_s10 = int_to_ptr.vmem [resolvable:$false] %s1252_s10 }
  0x77   : > { %s1254_s22 = scalar_lea.vmem %s1253_s10, 64  ;;  %p1255_p0 = scmp.lt.s32.totalorder %s1647_s12, %s1253_s10 }
  0x78   : > { %1053 = vmatpush3.xpose.msk.msra.mxu0 %vm380_vm0, %v370_v3  ;;  %p1251_p13 = pneg %p1250_p12  ;;  %p1256_p5 = scmp.lt.s32.totalorder %s1254_s22, %s1248_s17 }
  0x79   : > { %1054 = vmatprep.subr.msk.mxu0 %vm380_vm0, %v369_v4 }
  0x7a   : > { %p1257_p2 = por %p1256_p5, %p1255_p0 }
  0x7c   : > { %1055 = vmatpush3.xpose.msk.msra.mxu0 %vm380_vm0, %v369_v4  ;;  %p1258_p10 = pnand %p1257_p2, %p1251_p13 }
  0x7f   : > { %1057 = vmatmul.mubr.msk.f32.vlgmr.msra.gmra.mxu0 %vm380_vm0, %v1601_v5 }
 0x13f   : > { %v1058_v7 = vpop.f32.mrf.mxu0 }
 0x140   : > { %v471_v11 = vadd.f32 %v1058_v7, %v1007_v8 }
 0x141   : > { %v465_v9 = vpop.f32.mrf.mxu0 }
 0x142   : > { %v466_v12 = vadd.f32 %v1007_v8, %v465_v9  ;;  %v489_v15 = vadd.f32 %v1015_v13, %v471_v11 }
 0x144   : > { %v488_v14 = vadd.f32 %v1014_v10, %v466_v12 }
 0x146   : > { %1154 = vtanh.f32 %v488_v14 }
 0x147   : > { %1156 = vtanh.f32 %v489_v15 }
 0x153   : > { %v1155_v16 = vpop.eup %1154 }
 0x154   : > { %1060 = vmatpush3.xpose.msk.msra.mxu1 %vm380_vm0, %v1155_v16  ;;  %v1157_v18 = vpop.eup %1156 }
 0x155   : > { %1064 = vmatprep.subr.mxu1 %v1359_v6 }
 0x157   : > { %1062 = vmatmul.mubr.msk.f32.vlgmr.msra.gmra.mxu1 %vm380_vm0, %v492_v17 }
 0x158   : > { %1065 = vmatpush3.xpose.msk.msra.mxu1 %vm380_vm0, %v1157_v18  ;;  %1066 = vmatprep.mubr.msk.f32.mxu1 %vm1360_vm1, %v1359_v6 }
 0x159   : > { %1069 = vmatprep.subr.mxu1 %v1359_v6 }
 0x15b   : > { %1067 = vmatmul.mubr.msk.f32.vlgmr.msra.gmra.mxu1 %vm380_vm0, %v492_v17 }
 0x15c   : > { %1070 = vmatpush3.msra.mxu1 %v367_v2  ;;  %1071 = vmatprep.mubr.msk.f32.mxu1 %vm1360_vm1, %v1359_v6 }
 0x15d   : > { %1074 = vmatprep.subr.mxu1 %v1359_v6 }
 0x217   : > { %v567_v20 = vpop.f32.mrf.mxu1 }
 0x218   : > { %v568_v21 = vadd.f32 %v567_v20, %v494_v19 }
 0x219   : > { %v1063_v22 = vpop.f32.mrf.mxu1 }
 0x21a   : > { %v645_v23 = vsel %vm644_vm2, %v568_v21, -inf }
 0x21b   : > { %646 = vmax.xlane.f32.xlu0 %v645_v23  ;;  %v640_v24 = vpop.f32.mrf.mxu1 }
 0x21c   : > { %v641_v25 = vadd.f32 %v640_v24, %v494_v19 }
 0x21d   : > { %v1068_v26 = vpop.f32.mrf.mxu1 }
 0x21e   : > { %v648_v27 = vsel %vm644_vm2, %v641_v25, -inf }
 0x21f   : > { %649 = vmax.xlane.f32.xlu0 %v648_v27 }
 0x2a4   : > { %v647_v28 = vpop.xlane.xlu0 %646 }
 0x2a5   : > { %v651_v29 = vsub.f32 %v568_v21, %v647_v28 }
 0x2a7   : > { %v653_v30 = vmul.f32 1.442695, %v651_v29 }
 0x2a8   : > { %v650_v31 = vpop.xlane.xlu0 %649 }
 0x2a9   : > { %1158 = vpow2.f32 %v653_v30  ;;  %v652_v32 = vsub.f32 %v641_v25, %v650_v31 }
 0x2ab   : > { %v655_v33 = vmul.f32 1.442695, %v652_v32 }
 0x2ad   : > { %1160 = vpow2.f32 %v655_v33 }
 0x2b6   : > { %v1159_v34 = vpop.eup %1158 }
 0x2b7   : > { %v657_v35 = vsel %vm644_vm2, %v1159_v34, 0.0 }
 0x2b8   : > { %658 = vadd.xlane.f32.xlu1 %v657_v35 }
 0x2ba   : > { %v1161_v36 = vpop.eup %1160 }
 0x2bb   : > { %v660_v37 = vsel %vm644_vm2, %v1161_v36, 0.0 }
 0x2bc   : > { %661 = vadd.xlane.f32.xlu1 %v660_v37 }
 0x341   : > { %v659_v38 = vpop.xlane.xlu1 %658 }
 0x342   : > { %1162 = vrcp.f32 %v659_v38 }
 0x345   : > { %v662_v39 = vpop.xlane.xlu1 %661 }
 0x346   : > { %1164 = vrcp.f32 %v662_v39 }
 0x34f   : > { %v1163_v40 = vpop.eup %1162 }
 0x350   : > { %v665_v41 = vmul.f32 %v1163_v40, %v1159_v34 }
 0x352   : > { %1072 = vmatmul.mubr.msk.f32.vlgmr.msra.gmra.mxu1 %vm667_vm3, %v665_v41  ;;  %817 = vst.msk [vmem:[%s362_s21] sm:$0x1] %vm644_vm2, %v665_v41 }
 0x353   : > { %v1165_v42 = vpop.eup %1164  ;;  %1075 = vmatpush3.msra.mxu1 %v1601_v5  ;;  %1076 = vmatprep.mubr.msk.f32.mxu1 %vm1360_vm1, %v1359_v6 }
 0x354   : > { %v666_v43 = vmul.f32 %v1165_v42, %v1161_v36 }
 0x356   : > { %1077 = vmatmul.mubr.msk.f32.vlgmr.msra.gmra.mxu1 %vm667_vm3, %v666_v43  ;;  %818 = vst.msk [vmem:[%s362_s21 + $0x1] sm:$0x1] %vm644_vm2, %v666_v43 }
 0x357   : > { %1261 = shalt.err (!%p1258_p10)
}
 0x358   : > { %s1262_s19 = scalar_lea.hbm %s1645_s25, 32  ;;  %s1266_s16 = scalar_lea.hbm %s1734_s7, 64 }
 0x359   : > { %p1263_p1 = scmp.ne.s32.totalorder %s1645_s25, %s1262_s19  ;;  %p1267_p7 = scmp.lt.s32.totalorder %s1645_s25, %s1734_s7 }
 0x35a   : > { %p1268_p8 = scmp.lt.s32.totalorder %s1266_s16, %s1262_s19 }
 0x35b   : > { %p1264_p4 = pnand %p1263_p1, %p1759_p9 }
 0x35c   : > { %p1269_p11 = por %p1268_p8, %p1267_p7 }
 0x35d   : > { %p1265_p3 = pneg %p1264_p4 }
 0x35f   : > { %p1270_p6 = pnand %p1269_p11, %p1265_p3 }
 0x361   : > { %1273 = shalt.err (!%p1270_p6)
}
 0x362   : > { %s1362_s21 = smov 16   ;;  %s1363_s15 = smov 1   ;;  %vm814_vm4 = vcmask 253952  }
 0x363   : > { %1088 = dma.vmem_to_hbm [thread:$0]  (%p1759_p9), %s1647_s12, 32, %s1645_s25, %s825_s24, %s1362_s21, %s1362_s21, %s1363_s15  }
 0x364   : > { %s355_s28 = scalar_lea.vmem [#allocation9], %s1574_s30  ;;  %s1683_s22 = scalar_lea.hbm %s1733_s6, %s1032_s11 }
 0x365   : > { %s838_s17 = sshll.u32 %s355_s28, 4  ;;  %s820_s12 = scalar_lea.sflag [#allocation5], %s1571_s18  ;;  %s1676_s17 = int_to_ptr.vmem [resolvable:$true] %s838_s17 }
 0x366   : > { %s1274_s30 = scalar_lea.vmem %s1676_s17, 32  ;;  %s1364_s25 = smov [#allocation9]  }
 0x367   : > { %p1275_p12 = scmp.ne.s32.totalorder %s1676_s17, %s1274_s30  ;;  %s1278_s24 = sshll.u32 %s1364_s25, 4  ;;  %s1279_s24 = int_to_ptr.vmem [resolvable:$false] %s1278_s24 }
 0x368   : > { %s1280_s19 = scalar_lea.vmem %s1279_s24, 64  ;;  %p1281_p5 = scmp.lt.s32.totalorder %s1676_s17, %s1279_s24 }
 0x369   : > { %p1276_p13 = pnand %p1275_p12, %p1759_p9  ;;  %p1282_p2 = scmp.lt.s32.totalorder %s1280_s19, %s1274_s30 }
 0x36b   : > { %p1277_p0 = pneg %p1276_p13  ;;  %p1283_p10 = por %p1282_p2, %p1281_p5 }
 0x36d   : > { %p1284_p1 = pnand %p1283_p10, %p1277_p0 }
 0x412   : > { %v737_v44 = vpop.f32.mrf.mxu1 }
 0x413   : > { %815 = vst.msk [vmem:[%s355_s28] sm:$0x1] %vm814_vm4, %v737_v44 }
 0x414   : > { %v1073_v45 = vpop.f32.mrf.mxu1 }
 0x416   : > { %v810_v46 = vpop.f32.mrf.mxu1 }
 0x417   : > { %816 = vst.msk [vmem:[%s355_s28 + $0x1] sm:$0x1] %vm814_vm4, %v810_v46 }
 0x418   : > { %v1078_v47 = vpop.f32.mrf.mxu1 }
 0x419   : > { %1287 = shalt.err (!%p1284_p1)
}
 0x41a   : > { %s1288_s5 = scalar_lea.hbm %s1683_s22, 32  ;;  %s1292_s8 = scalar_lea.hbm %s1733_s6, 64 }
 0x41b   : > { %p1289_p4 = scmp.ne.s32.totalorder %s1683_s22, %s1288_s5  ;;  %p1293_p8 = scmp.lt.s32.totalorder %s1683_s22, %s1733_s6 }
 0x41c   : > { %p1294_p11 = scmp.lt.s32.totalorder %s1292_s8, %s1288_s5 }
 0x41d   : > { %p1290_p3 = pnand %p1289_p4, %p1759_p9 }
 0x41e   : > { %p1295_p6 = por %p1294_p11, %p1293_p8 }
 0x41f   : > { %p1291_p7 = pneg %p1290_p3 }
 0x421   : > { %p1296_p12 = pnand %p1295_p6, %p1291_p7 }
 0x423   : > { %1299 = shalt.err (!%p1296_p12)
}
 0x424   : > { %1087 = dma.vmem_to_hbm [thread:$0]  (%p1759_p9), %s1676_s17, 32, %s1683_s22, %s820_s12, %s1362_s21, %s1362_s21, %s1363_s15  }
 0x425 PF: > { %s869_s20 = sand.u32 1, %s1338_s26   ;;  %p1760_p13 = scmp.ne.s32.totalorder %s1745_s9, 0 }
 0x426   : > { %p1761_p0 = scmp.ge.s32.totalorder %s1350_s29, 2  ;;  %s870_s0 = scalar_lea.sflag [#allocation5], %s869_s20 }
 0x428   : > { %p1103_p5 = pnand %p1761_p0, %p1760_p13 }
 0x42a   : > { %p1104_p2 = pneg %p1103_p5 }
 0x42c   : > { %1329 = dma.done.wait (%p1104_p2), %s870_s0, 32  }
 0x42d   : > { %1331 = vsyncadd (%p1104_p2), %s870_s0, 4294967264  ;;  %s879_s28 = scalar_lea.sflag [#allocation11], %s869_s20 }
 0x42e   : > { %1333 = dma.done.wait (%p1104_p2), %s879_s28, 32  }
 0x42f   : > { %1335 = vsyncadd (%p1104_p2), %s879_s28, 4294967264  ;;  %s1762_s23 = sld [smem:[#allocation17_spill]]  ;;  %p28_p9 = scmp.ge.s32.totalorder %s1462_s14, 4  }
 0x430   : > { %s1763_s28 = sld [smem:[#allocation18_spill]]  ;;  %s1764_s26 = smov %s1342_s27 }
 0x431   : > { %s1766_s29 = smov %s1462_s14  ;;  %30 = sbr.rel (!%p28_p9) target bundleno = 13 (0xd), region = 123 }
 0x435   : > { %s1765_s27 = smov %s1762_s23 }
 0x436   :  { %884 = vsyncpa [#allocation4], 1 }
 0x437   :  { %886 = vsyncpa [#allocation4 + $0x1], 1 }
 0x438   :  { %887 = vsyncpa [#allocation7], 1 }
 0x439   :  { %889 = vsyncpa [#allocation7 + $0x1], 1 }
 0x43a   :  { %890 = vsyncpa [#allocation5], 1 }
 0x43b   :  { %892 = vsyncpa [#allocation5 + $0x1], 1 }
 0x43c   :  { %893 = vsyncpa [#allocation11], 1 }
 0x43d   :  { %895 = vsyncpa [#allocation11 + $0x1], 1 }

</bundles_post_ra>
